<compile_context>
chip_gen: v7x
topology: tpu7x:2x2x1
jax: 0.10.0
libtpu: 0.0.40
codegen_flags: <defaults>
</compile_context>

<pallas_src>
import jax
import jax.numpy as jnp
from jax.experimental import pallas as pl
from jax.experimental.pallas import tpu as pltpu

IN_SPACE = 10   # vocab size
DIM = 5         # embedding dim (EmbeddingNetwork1 default dim=5)

_LANE = 128
_SUBLANE = 8
_MAX_BLOCK_ROWS = 64   # 64 * 128 = 8192 tokens per grid step


def _emb_linear_kernel(logit_ref, idx_ref, o_ref):
    """logit (V,) f32 in SMEM | idx (R, 128) i32 in VMEM -> o (R, 128) f32 (lane+sublane dense)."""
    idx = idx_ref[...]                                   # (block_rows, 128) int32
    # Unrolled scalar select chain over the 10 precomputed logits (bias already folded in).
    acc = jnp.full(idx.shape, logit_ref[0], jnp.float32)
    for v in range(1, IN_SPACE):
        acc = jnp.where(idx == v, logit_ref[v], acc)
    o_ref[...] = acc


def embedding_network1(indices, emb_table, w, b):
    """indices: (B, S) int32 -> (B, S, 1) float32, matching PyTorch EmbeddingNetwork1."""
    B, S = indices.shape
    V, D = emb_table.shape
    n_tok = B * S

    # Grid-invariant: per-vocab logits with the bias folded in (10 floats). Tiny XLA op.
    logits = (emb_table.astype(jnp.float32) @ w.reshape(-1).astype(jnp.float32)
              + b.reshape(()).astype(jnp.float32))       # (V,)

    # 2-D token layout: (rows, 128), rows a multiple of 8 so every vreg is fully populated.
    rows = pl.cdiv(n_tok, _LANE)
    rows = ((rows + _SUBLANE - 1) // _SUBLANE) * _SUBLANE
    if rows >= 2 * _SUBLANE:
        # Keep >= 2 grid steps so both v7x TensorCores get work; cap the block at 8192 tokens.
        block_rows = min(_MAX_BLOCK_ROWS, (rows // 2 // _SUBLANE) * _SUBLANE)
    else:
        block_rows = rows
    rows_pad = ((rows + block_rows - 1) // block_rows) * block_rows
    n_pad = rows_pad * _LANE

    idx_flat = indices.reshape(-1).astype(jnp.int32)
    if n_pad != n_tok:
        # TODO(synk): for production B*S, mask the ragged tail in-kernel instead of padding here.
        idx_flat = jnp.pad(idx_flat, (0, n_pad - n_tok))
    idx_2d = idx_flat.reshape(rows_pad, _LANE)

    out = pl.pallas_call(
        _emb_linear_kernel,
        out_shape=jax.ShapeDtypeStruct((rows_pad, _LANE), jnp.float32),
        grid=(rows_pad // block_rows,),
        in_specs=[
            pl.BlockSpec(memory_space=pltpu.MemorySpace.SMEM),          # logits (V,) in SMEM
            pl.BlockSpec((block_rows, _LANE), lambda i: (i, 0)),        # indices, dense 2-D blocks
        ],
        out_specs=pl.BlockSpec((block_rows, _LANE), lambda i: (i, 0)),  # dense 2-D output blocks
        compiler_params=pltpu.CompilerParams(
            dimension_semantics=("parallel",)),                         # shard blocks across TCs
    )(logits, idx_2d)

    return out.reshape(-1)[:n_tok].reshape(B, S, 1)


def _reference(indices, emb_table, w, b):
    emb = emb_table[indices]                             # (B, S, D)
    lin = jnp.einsum('bsd,od->bso', emb, w) + b          # (B, S, 1)
    return lin


if __name__ == "__main__":
    key = jax.random.PRNGKey(0)
    k_idx, k_emb, k_w, k_b = jax.random.split(key, 4)

    B, S = 2, 8
    indices = jax.random.randint(k_idx, (B, S), 0, IN_SPACE, dtype=jnp.int32)

    # Deterministic synthetic parameters (shapes match nn.Embedding(10, 5), nn.Linear(5, 1)).
    emb_table = jax.random.normal(k_emb, (IN_SPACE, DIM), dtype=jnp.float32)
    w = jax.random.normal(k_w, (1, DIM), dtype=jnp.float32) * (1.0 / jnp.sqrt(DIM))
    b = jax.random.normal(k_b, (1,), dtype=jnp.float32) * (1.0 / jnp.sqrt(DIM))

    out = embedding_network1(indices, emb_table, w, b)
    out = jax.block_until_ready(out)

    ref = _reference(indices, emb_table, w, b)
    assert out.shape == (B, S, 1), out.shape
    assert jnp.allclose(out, ref, atol=1e-5, rtol=1e-5), "mismatch vs JAX reference"

    print("KERNEL_OK")
</pallas_src>

<mosaic_0001>
module attributes {stable_mosaic.version = 11 : i64} {
  func.func @_emb_linear_kernel(%arg0: i32, %arg1: memref<10xf32, #tpu.memory_space<smem>>, %arg2: memref<8x128xi32, #tpu.memory_space<vmem>>, %arg3: memref<8x128xf32, #tpu.memory_space<vmem>>) attributes {dimension_semantics = [#tpu.dimension_semantics<parallel>], iteration_bounds = array<i64: 1>, scalar_prefetch = 0 : i64, scratch_operands = 0 : i64, tpu.core_type = #tpu.core_type<tc>, window_params = [{transform_indices = @transform_0, window_bounds = array<i64: 10>}, {transform_indices = @transform_1, window_bounds = array<i64: 8, 128>}, {transform_indices = @transform_2, window_bounds = array<i64: 8, 128>}]} {
    %c0 = arith.constant 0 : index
    %c0_0 = arith.constant 0 : index
    %0 = vector.load %arg2[%c0, %c0_0] : memref<8x128xi32, #tpu.memory_space<vmem>>, vector<8x128xi32>
    %c0_1 = arith.constant 0 : index
    %1 = memref.load %arg1[%c0_1] : memref<10xf32, #tpu.memory_space<smem>>
    %2 = vector.broadcast %1 : f32 to vector<8x128xf32>
    %c1_i32 = arith.constant 1 : i32
    %3 = vector.broadcast %c1_i32 : i32 to vector<8x128xi32>
    %4 = arith.cmpi eq, %0, %3 : vector<8x128xi32>
    %c1 = arith.constant 1 : index
    %5 = memref.load %arg1[%c1] : memref<10xf32, #tpu.memory_space<smem>>
    %6 = vector.broadcast %5 : f32 to vector<8x128xf32>
    %7 = arith.select %4, %6, %2 : vector<8x128xi1>, vector<8x128xf32>
    %c2_i32 = arith.constant 2 : i32
    %8 = vector.broadcast %c2_i32 : i32 to vector<8x128xi32>
    %9 = arith.cmpi eq, %0, %8 : vector<8x128xi32>
    %c2 = arith.constant 2 : index
    %10 = memref.load %arg1[%c2] : memref<10xf32, #tpu.memory_space<smem>>
    %11 = vector.broadcast %10 : f32 to vector<8x128xf32>
    %12 = arith.select %9, %11, %7 : vector<8x128xi1>, vector<8x128xf32>
    %c3_i32 = arith.constant 3 : i32
    %13 = vector.broadcast %c3_i32 : i32 to vector<8x128xi32>
    %14 = arith.cmpi eq, %0, %13 : vector<8x128xi32>
    %c3 = arith.constant 3 : index
    %15 = memref.load %arg1[%c3] : memref<10xf32, #tpu.memory_space<smem>>
    %16 = vector.broadcast %15 : f32 to vector<8x128xf32>
    %17 = arith.select %14, %16, %12 : vector<8x128xi1>, vector<8x128xf32>
    %c4_i32 = arith.constant 4 : i32
    %18 = vector.broadcast %c4_i32 : i32 to vector<8x128xi32>
    %19 = arith.cmpi eq, %0, %18 : vector<8x128xi32>
    %c4 = arith.constant 4 : index
    %20 = memref.load %arg1[%c4] : memref<10xf32, #tpu.memory_space<smem>>
    %21 = vector.broadcast %20 : f32 to vector<8x128xf32>
    %22 = arith.select %19, %21, %17 : vector<8x128xi1>, vector<8x128xf32>
    %c5_i32 = arith.constant 5 : i32
    %23 = vector.broadcast %c5_i32 : i32 to vector<8x128xi32>
    %24 = arith.cmpi eq, %0, %23 : vector<8x128xi32>
    %c5 = arith.constant 5 : index
    %25 = memref.load %arg1[%c5] : memref<10xf32, #tpu.memory_space<smem>>
    %26 = vector.broadcast %25 : f32 to vector<8x128xf32>
    %27 = arith.select %24, %26, %22 : vector<8x128xi1>, vector<8x128xf32>
    %c6_i32 = arith.constant 6 : i32
    %28 = vector.broadcast %c6_i32 : i32 to vector<8x128xi32>
    %29 = arith.cmpi eq, %0, %28 : vector<8x128xi32>
    %c6 = arith.constant 6 : index
    %30 = memref.load %arg1[%c6] : memref<10xf32, #tpu.memory_space<smem>>
    %31 = vector.broadcast %30 : f32 to vector<8x128xf32>
    %32 = arith.select %29, %31, %27 : vector<8x128xi1>, vector<8x128xf32>
    %c7_i32 = arith.constant 7 : i32
    %33 = vector.broadcast %c7_i32 : i32 to vector<8x128xi32>
    %34 = arith.cmpi eq, %0, %33 : vector<8x128xi32>
    %c7 = arith.constant 7 : index
    %35 = memref.load %arg1[%c7] : memref<10xf32, #tpu.memory_space<smem>>
    %36 = vector.broadcast %35 : f32 to vector<8x128xf32>
    %37 = arith.select %34, %36, %32 : vector<8x128xi1>, vector<8x128xf32>
    %c8_i32 = arith.constant 8 : i32
    %38 = vector.broadcast %c8_i32 : i32 to vector<8x128xi32>
    %39 = arith.cmpi eq, %0, %38 : vector<8x128xi32>
    %c8 = arith.constant 8 : index
    %40 = memref.load %arg1[%c8] : memref<10xf32, #tpu.memory_space<smem>>
    %41 = vector.broadcast %40 : f32 to vector<8x128xf32>
    %42 = arith.select %39, %41, %37 : vector<8x128xi1>, vector<8x128xf32>
    %c9_i32 = arith.constant 9 : i32
    %43 = vector.broadcast %c9_i32 : i32 to vector<8x128xi32>
    %44 = arith.cmpi eq, %0, %43 : vector<8x128xi32>
    %c9 = arith.constant 9 : index
    %45 = memref.load %arg1[%c9] : memref<10xf32, #tpu.memory_space<smem>>
    %46 = vector.broadcast %45 : f32 to vector<8x128xf32>
    %47 = arith.select %44, %46, %42 : vector<8x128xi1>, vector<8x128xf32>
    %c0_2 = arith.constant 0 : index
    %c0_3 = arith.constant 0 : index
    %48 = vector.load %arg3[%c0_2, %c0_3] : memref<8x128xf32, #tpu.memory_space<vmem>>, vector<8x128xf32>
    tpu.vector_store %arg3[%c0_2, %c0_3], %47 {strides = array<i32>} : memref<8x128xf32, #tpu.memory_space<vmem>>, vector<8x128xf32>,
    return
  }
  func.func @transform_0(%arg0: i32) -> i32 {
    %c0_i32 = arith.constant 0 : i32
    %c0_i32_0 = arith.constant 0 : i32
    return %c0_i32 : i32
  }
  func.func @transform_1(%arg0: i32) -> (i32, i32) {
    %c0_i32 = arith.constant 0 : i32
    %c0_i32_0 = arith.constant 0 : i32
    return %arg0, %c0_i32 : i32, i32
  }
  func.func @transform_2(%arg0: i32) -> (i32, i32) {
    %c0_i32 = arith.constant 0 : i32
    %c0_i32_0 = arith.constant 0 : i32
    return %arg0, %c0_i32 : i32, i32
  }
}

</mosaic_0001>

<bundles_post_ra>
// kernel: tpu_custom_call.1
= control target key start
LH: loop header
LB: loop body
LE: loop exit
PB: predicated region body
PF: predicated region fallthrough
CT: control target
= control target key end

     0   :  { %7 = vsyncpa [#allocation5], 0  ;;  %s217_s0 = inlined_call_operand.hbm [shape: f32[10], index: 0, kind: input, shape index: {}]   ;;  %s218_s1 = inlined_call_operand.hbm [shape: s32[8,128], index: 1, kind: input, shape index: {}]   ;;  %s219_s2 = inlined_call_operand.hbm [shape: f32[8,128], index: 2, kind: output, shape index: {}]  }
   0x1   :  { %8 = vsyncpa [#allocation3], 0 }
   0x2   :  { %9 = vsyncpa [#allocation4], 0  ;;  %s103_s11 = scalar_lea.hbm %s217_s0, 16 }
   0x3   :  { %p104_p0 = scmp.ne.s32.totalorder %s217_s0, %s103_s11  ;;  %p107_p1 = scmp.lt.u32.totalorder %s103_s11, %s217_s0 }
   0x5   :  { %p109_p2 = pnand %p107_p1, %p104_p0 }
   0x7   :  { %112 = shalt.err (!%p109_p2)
}
   0x8   :  { %s163_s16 = smov [#allocation2]   ;;  %s164_s19 = smov [#allocation6]  }
   0x9   :  { %17 = dma.hbm_to_smem %s217_s0, 16, %s163_s16, [#allocation5]  }
   0xa   :  { %s24_s20 = sshll.u32 %s164_s19, 4  ;;  %s113_s23 = scalar_lea.hbm %s218_s1, 128  ;;  %s25_s20 = int_to_ptr.vmem [resolvable:$true] %s24_s20 }
   0xb   :  { %p114_p3 = scmp.ne.s32.totalorder %s218_s1, %s113_s23  ;;  %p117_p4 = scmp.lt.u32.totalorder %s113_s23, %s218_s1 }
   0xd   :  { %p119_p5 = pnand %p117_p4, %p114_p3 }
   0xf   :  { %122 = shalt.err (!%p119_p5)
}
  0x10   :  { %s123_s28 = scalar_lea.vmem %s25_s20, 128  ;;  %p128_p7 = scmp.lt.s32.totalorder %s25_s20, %s25_s20 }
  0x11   :  { %p124_p6 = scmp.ne.s32.totalorder %s25_s20, %s123_s28  ;;  %p129_p8 = scmp.lt.s32.totalorder %s123_s28, %s123_s28 }
  0x13   :  { %p130_p9 = por %p129_p8, %p128_p7 }
  0x15   :  { %p131_p10 = pnand %p130_p9, %p124_p6 }
  0x17   :  { %134 = shalt.err (!%p131_p10)
}
  0x18   :  { %27 = dma.hbm_to_vmem [thread:$0]  %s218_s1, 128, %s25_s20, [#allocation3]  }
  0x19   :  { %157 = dma.done.wait [#allocation5], 16  }
  0x1a   :  { %158 = vsyncadd [#allocation5], 4294967280 }
  0x1b   :  { %159 = dma.done.wait [#allocation3], 128  }
  0x1c   :  { %160 = vsyncadd [#allocation3], 4294967168 }
  0x1d   :  { %34 = sfence }
  0x1e   :  { %s36_s30 = sld [smem:[#allocation2]]  ;;  %s91_s3 = sld [smem:[#allocation2 + $0x1]]  ;;  %v35_v0 = vld [vmem:[#allocation6] sm:$0xff] }
  0x1f   :  { %s92_s4 = sld [smem:[#allocation2 + $0x2]]  ;;  %s93_s5 = sld [smem:[#allocation2 + $0x3]]  ;;  %vm38_vm0 = vcmp.eq.s32.totalorder %v35_v0, 1  ;;  %vm42_vm1 = vcmp.eq.s32.totalorder %v35_v0, 2  ;;  %vm46_vm2 = vcmp.eq.s32.totalorder %v35_v0, 3  ;;  %vm50_vm3 = vcmp.eq.s32.totalorder %v35_v0, 4 }
  0x20   :  { %s94_s6 = sld [smem:[#allocation2 + $0x4]]  ;;  %s95_s7 = sld [smem:[#allocation2 + $0x5]]  ;;  %vm54_vm4 = vcmp.eq.s32.totalorder %v35_v0, 5  ;;  %vm58_vm5 = vcmp.eq.s32.totalorder %v35_v0, 6  ;;  %vm62_vm6 = vcmp.eq.s32.totalorder %v35_v0, 7  ;;  %vm66_vm7 = vcmp.eq.s32.totalorder %v35_v0, 8 }
  0x21   :  { %s96_s8 = sld [smem:[#allocation2 + $0x6]]  ;;  %s97_s9 = sld [smem:[#allocation2 + $0x7]]  ;;  %vm70_vm8 = vcmp.eq.s32.totalorder %v35_v0, 9 }
  0x22   :  { %s98_s10 = sld [smem:[#allocation2 + $0x8]]  ;;  %s99_s11 = sld [smem:[#allocation2 + $0x9]] }
  0x23   :  { %s165_s1 = smov [#allocation7]  }
  0x24   :  { %v37_v1 = vstv %s36_s30  ;;  %v40_v2 = vstv %s91_s3  ;;  %s81_s12 = sshll.u32 %s165_s1, 4  ;;  %s82_s12 = int_to_ptr.vmem [resolvable:$true] %s81_s12 }
  0x25   :  { %v41_v3 = vsel %vm38_vm0, %v40_v2, %v37_v1  ;;  %v44_v4 = vstv %s92_s4  ;;  %v48_v6 = vstv %s93_s5  ;;  %s135_s13 = scalar_lea.vmem %s82_s12, 128  ;;  %p140_p12 = scmp.lt.s32.totalorder %s82_s12, %s82_s12 }
  0x26   :  { %v45_v5 = vsel %vm42_vm1, %v44_v4, %v41_v3  ;;  %v52_v7 = vstv %s94_s6  ;;  %v56_v9 = vstv %s95_s7  ;;  %p136_p11 = scmp.ne.s32.totalorder %s82_s12, %s135_s13  ;;  %p141_p13 = scmp.lt.s32.totalorder %s135_s13, %s135_s13 }
  0x27   :  { %v49_v8 = vsel %vm46_vm2, %v48_v6, %v45_v5  ;;  %v60_v10 = vstv %s96_s8  ;;  %v64_v12 = vstv %s97_s9 }
  0x28   :  { %v53_v11 = vsel %vm50_vm3, %v52_v7, %v49_v8  ;;  %v68_v14 = vstv %s98_s10  ;;  %v72_v16 = vstv %s99_s11  ;;  %p142_p0 = por %p141_p13, %p140_p12 }
  0x29   :  { %v57_v13 = vsel %vm54_vm4, %v56_v9, %v53_v11 }
  0x2a   :  { %v61_v15 = vsel %vm58_vm5, %v60_v10, %v57_v13  ;;  %p143_p1 = pnand %p142_p0, %p136_p11 }
  0x2b   :  { %v65_v17 = vsel %vm62_vm6, %v64_v12, %v61_v15 }
  0x2c   :  { %v69_v18 = vsel %vm66_vm7, %v68_v14, %v65_v17 }
  0x2d   :  { %v73_v19 = vsel %vm70_vm8, %v72_v16, %v69_v18 }
  0x2e   :  { %74 = vst [vmem:[#allocation7] sm:$0xff] %v73_v19 }
  0x2f   :  { %146 = shalt.err (!%p143_p1)
}
  0x30   :  { %s147_s16 = scalar_lea.hbm %s219_s2, 128 }
  0x31   :  { %p148_p2 = scmp.ne.s32.totalorder %s219_s2, %s147_s16  ;;  %p151_p3 = scmp.lt.u32.totalorder %s147_s16, %s219_s2 }
  0x33   :  { %p153_p4 = pnand %p151_p3, %p148_p2 }
  0x35   :  { %156 = shalt.err (!%p153_p4)
}
  0x36   :  { %84 = dma.vmem_to_hbm [thread:$0]  %s82_s12, 128, %s219_s2, [#allocation4]  }
  0x37   :  { %161 = dma.done.wait [#allocation4], 128  }
  0x38   :  { %162 = vsyncadd [#allocation4], 4294967168 }
  0x39   :  { %88 = vsyncpa [#allocation3], 1 }
  0x3a   :  { %89 = vsyncpa [#allocation4], 1 }
  0x3b   :  { %90 = vsyncpa [#allocation5], 1 }

</bundles_post_ra>
